<compile_context>
chip_gen: v7x
topology: tpu7x:2x2x1
jax: 0.10.0
libtpu: 0.0.40
codegen_flags: <defaults>
</compile_context>

<pallas_src>
import functools

import jax
import jax.numpy as jnp
from jax.experimental import pallas as pl
from jax.experimental.pallas import tpu as pltpu

_LANE = 128
_SUBLANE = 8


def _round_up(n, m):
    return ((n + m - 1) // m) * m


def _default_bf16_tanh():
    """bf16 tanh on v6e/v7x (EUP bf16 path); f32 tanh on v5e (no bf16 VPU/EUP)."""
    try:
        kind = jax.devices()[0].device_kind.lower()
    except Exception:
        return True
    if "v5 lite" in kind or "v5e" in kind or "v5litepod" in kind:
        return False
    return True


def ddpg_actor_kernel(x_ref, w1_ref, b1_ref, w2_ref, b2_ref, w3_ref, b3_ref, o_ref,
                      *, tanh_dtype):
    # fc1 + tanh: bf16 MXU operands, f32 accumulation; K = state_dim (unpadded, MXU pads
    # internally).  tanh runs in tanh_dtype (bf16 on v6e/v7x, f32 on v5e) on the EUP.
    x = x_ref[...].astype(jnp.bfloat16)
    a1 = jnp.dot(x, w1_ref[...], preferred_element_type=jnp.float32) + b1_ref[...]
    h1 = jnp.tanh(a1.astype(tanh_dtype)).astype(jnp.bfloat16)
    # fc2 + tanh
    a2 = jnp.dot(h1, w2_ref[...], preferred_element_type=jnp.float32) + b2_ref[...]
    h2 = jnp.tanh(a2.astype(tanh_dtype)).astype(jnp.bfloat16)
    # fc3 (no activation, as in the PyTorch forward)
    out = jnp.dot(h2, w3_ref[...], preferred_element_type=jnp.float32) + b3_ref[...]
    o_ref[...] = out.astype(o_ref.dtype)


def _vmem_estimate_bytes(tb, S, H1p, H2p, A):
    x_tiles = 2 * tb * S * 4                                  # double-buffered x tile (f32)
    out_tiles = 2 * tb * A * 4                                # double-buffered out tile (f32)
    weights = 2 * (S * H1p + H1p * H2p + H2p * A) * 2         # bf16 weights, 2 buffers each
    biases = 2 * (H1p + H2p + A) * 4                          # f32 biases, 2 buffers each
    inter = tb * (H1p + H2p) * (4 + 2)                        # f32 accums + bf16 h1/h2
    return x_tiles + out_tiles + weights + biases + inter


def prepare_actor_params(params):
    """One-time pad (hidden dims -> multiples of 128) and bf16 cast of the weights.

    Done once at init / parameter-update time so the per-call forward graph has no pad or
    convert ops on the critical path.  The first (state) and last (action) dims stay unpadded.
    """
    w1, b1 = params["w1"], params["b1"]
    w2, b2 = params["w2"], params["b2"]
    w3, b3 = params["w3"], params["b3"]
    state_dim, h1 = w1.shape
    h2 = w2.shape[1]
    act = w3.shape[1]
    H1_p = _round_up(h1, _LANE)
    H2_p = _round_up(h2, _LANE)

    def pad2(a, rows, cols, dtype):
        a = jnp.pad(a, ((0, rows - a.shape[0]), (0, cols - a.shape[1])))
        return a.astype(dtype)

    return dict(
        w1=pad2(w1, state_dim, H1_p, jnp.bfloat16), b1=pad2(b1, 1, H1_p, jnp.float32),
        w2=pad2(w2, H1_p, H2_p, jnp.bfloat16),      b2=pad2(b2, 1, H2_p, jnp.float32),
        w3=pad2(w3, H2_p, act, jnp.bfloat16),       b3=pad2(b3, 1, act, jnp.float32),
    )


def ddpg_actor_forward(x, prepared, *, batch_tile=None, bf16_tanh=True):
    """x: (B, state_dim) f32. prepared: output of prepare_actor_params (padded/bf16)."""
    B, state_dim = x.shape
    w1, b1 = prepared["w1"], prepared["b1"]
    w2, b2 = prepared["w2"], prepared["b2"]
    w3, b3 = prepared["w3"], prepared["b3"]
    assert w1.shape[0] == state_dim, "prepared params do not match x's state_dim"
    H1_p = w1.shape[1]
    H2_p = w2.shape[1]
    act = w3.shape[1]

    # Batch tile: multiple of 8, capped at 1024 (resident weights ~100 KiB bf16, so even big
    # tiles fit v7x's 64 MiB VMEM).  Prefer >=2 grid steps when the batch is big enough so
    # dimension_semantics=("parallel",) can shard across v7x's two TensorCores.
    if batch_tile is None:
        tb = min(1024, _round_up(B, _SUBLANE))
        if _round_up(B, _SUBLANE) // tb <= 1 and tb >= 2 * _SUBLANE:
            tb = _round_up(pl.cdiv(tb, 2), _SUBLANE)
    else:
        tb = _round_up(batch_tile, _SUBLANE)
    B_p = _round_up(B, tb)

    # Only the batch dim is (possibly) padded; the state dim is streamed unpadded.
    x_p = x if B_p == B else jnp.pad(x, ((0, B_p - B), (0, 0)))

    grid = (B_p // tb,)

    in_specs = [
        # x: streamed per batch tile; last dim = full array dim (legal under (8,128) rule),
        # per-tile DMA stays contiguous since only the row index varies.
        pl.BlockSpec((tb, state_dim), lambda i: (i, 0)),
        pl.BlockSpec((state_dim, H1_p), lambda i: (0, 0)),   # w1 (resident)
        pl.BlockSpec((1, H1_p), lambda i: (0, 0)),           # b1
        pl.BlockSpec((H1_p, H2_p), lambda i: (0, 0)),        # w2
        pl.BlockSpec((1, H2_p), lambda i: (0, 0)),           # b2
        pl.BlockSpec((H2_p, act), lambda i: (0, 0)),         # w3
        pl.BlockSpec((1, act), lambda i: (0, 0)),            # b3
    ]
    # Output block's last dim = full array dim (action_dim): masked stores, but ~16x fewer
    # output bytes than lane-padding to 128, and no post-call lane slice.
    out_spec = pl.BlockSpec((tb, act), lambda i: (i, 0))

    vmem_limit = int(min(64 * 1024 * 1024,
                         max(32 * 1024 * 1024,
                             2 * _vmem_estimate_bytes(tb, state_dim, H1_p, H2_p, act))))

    tanh_dtype = jnp.bfloat16 if bf16_tanh else jnp.float32

    out_p = pl.pallas_call(
        functools.partial(ddpg_actor_kernel, tanh_dtype=tanh_dtype),
        out_shape=jax.ShapeDtypeStruct((B_p, act), x.dtype),
        grid_spec=pltpu.PrefetchScalarGridSpec(
            num_scalar_prefetch=0,
            grid=grid,
            in_specs=in_specs,
            out_specs=out_spec,
        ),
        compiler_params=pltpu.CompilerParams(
            dimension_semantics=("parallel",),
            vmem_limit_bytes=vmem_limit,
        ),
    )(x_p, w1, b1, w2, b2, w3, b3)

    return out_p if B_p == B else out_p[:B]


def init_params(key, state_dim, action_dim, hidden_dim1, hidden_dim2):
    """Deterministic synthetic init (uniform, a la PyTorch Linear's bound=1/sqrt(fan_in))."""
    ks = jax.random.split(key, 6)

    def lin(kw, kb, fan_in, fan_out):
        bound = 1.0 / jnp.sqrt(fan_in)
        w = jax.random.uniform(kw, (fan_in, fan_out), jnp.float32, -bound, bound)
        b = jax.random.uniform(kb, (1, fan_out), jnp.float32, -bound, bound)
        return w, b

    w1, b1 = lin(ks[0], ks[1], state_dim, hidden_dim1)
    w2, b2 = lin(ks[2], ks[3], hidden_dim1, hidden_dim2)
    w3, b3 = lin(ks[4], ks[5], hidden_dim2, action_dim)
    return dict(w1=w1, b1=b1, w2=w2, b2=b2, w3=w3, b3=b3)


def _reference_matched(x, p, bf16_tanh):
    """Mimics the kernel's dtype flow (bf16 MXU operands, f32 accumulation, chosen tanh dtype)."""
    tanh_dtype = jnp.bfloat16 if bf16_tanh else jnp.float32

    def layer(h, w, b, activate):
        y = jnp.dot(h.astype(jnp.bfloat16), w.astype(jnp.bfloat16),
                    preferred_element_type=jnp.float32) + b
        return jnp.tanh(y.astype(tanh_dtype)).astype(jnp.float32) if activate else y

    h1 = layer(x, p["w1"], p["b1"], True)
    h2 = layer(h1, p["w2"], p["b2"], True)
    return layer(h2, p["w3"], p["b3"], False)


def _reference_f32(x, p):
    h1 = jnp.tanh(x @ p["w1"] + p["b1"])
    h2 = jnp.tanh(h1 @ p["w2"] + p["b2"])
    return h2 @ p["w3"] + p["b3"]


if __name__ == "__main__":
    # Small shapes consistent with the module's forward: x is (batch, state_dim).
    # NOTE: at this size the kernel is dispatch/DMA-latency bound; stack many environment
    # states along the batch axis in real use so the multi-step grid pipelines the x DMA
    # and fills the MXU.
    batch, state_dim, action_dim = 8, 16, 8
    hidden_dim1, hidden_dim2 = 128, 64

    key = jax.random.PRNGKey(0)
    kx, kp = jax.random.split(key)
    x = jax.random.normal(kx, (batch, state_dim), dtype=jnp.float32)
    params = init_params(kp, state_dim, action_dim, hidden_dim1, hidden_dim2)
    prepared = prepare_actor_params(params)       # one-time pad + bf16 cast of weights

    bf16_tanh = _default_bf16_tanh()
    fwd = jax.jit(ddpg_actor_forward, static_argnames=("batch_tile", "bf16_tanh"))
    out = jax.block_until_ready(fwd(x, prepared, bf16_tanh=bf16_tanh))

    ref_match = _reference_matched(x, params, bf16_tanh)
    ref_f32 = _reference_f32(x, params)

    assert out.shape == (batch, action_dim)
    assert jnp.allclose(out, ref_match, atol=5e-3, rtol=5e-3), "mismatch vs dtype-matched reference"
    # bf16 weights/activations give ~1e-2 relative error vs the exact f32 reference.
    assert jnp.allclose(out, ref_f32, atol=4e-2, rtol=4e-2), "mismatch vs f32 reference"

    print("KERNEL_OK")
</pallas_src>

<mosaic_0001>
module attributes {stable_mosaic.version = 11 : i64} {
  func.func @ddpg_actor_kernel(%arg0: i32, %arg1: memref<8x16xf32, #tpu.memory_space<vmem>>, %arg2: memref<16x128xbf16, #tpu.memory_space<vmem>>, %arg3: memref<1x128xf32, #tpu.memory_space<vmem>>, %arg4: memref<128x128xbf16, #tpu.memory_space<vmem>>, %arg5: memref<1x128xf32, #tpu.memory_space<vmem>>, %arg6: memref<128x8xbf16, #tpu.memory_space<vmem>>, %arg7: memref<1x8xf32, #tpu.memory_space<vmem>>, %arg8: memref<8x8xf32, #tpu.memory_space<vmem>>) attributes {dimension_semantics = [#tpu.dimension_semantics<parallel>], iteration_bounds = array<i64: 1>, scalar_prefetch = 0 : i64, scratch_operands = 0 : i64, tpu.core_type = #tpu.core_type<tc>, window_params = [{transform_indices = @transform_0, window_bounds = array<i64: 8, 16>}, {pipeline_mode = #tpu.pipeline_mode<synchronous>, transform_indices = @transform_1, window_bounds = array<i64: 16, 128>}, {pipeline_mode = #tpu.pipeline_mode<synchronous>, transform_indices = @transform_2, window_bounds = array<i64: 1, 128>}, {pipeline_mode = #tpu.pipeline_mode<synchronous>, transform_indices = @transform_3, window_bounds = array<i64: 128, 128>}, {pipeline_mode = #tpu.pipeline_mode<synchronous>, transform_indices = @transform_4, window_bounds = array<i64: 1, 128>}, {pipeline_mode = #tpu.pipeline_mode<synchronous>, transform_indices = @transform_5, window_bounds = array<i64: 128, 8>}, {pipeline_mode = #tpu.pipeline_mode<synchronous>, transform_indices = @transform_6, window_bounds = array<i64: 1, 8>}, {transform_indices = @transform_7, window_bounds = array<i64: 8, 8>}]} {
    %c0 = arith.constant 0 : index
    %c0_0 = arith.constant 0 : index
    %0 = vector.load %arg1[%c0, %c0_0] : memref<8x16xf32, #tpu.memory_space<vmem>>, vector<8x16xf32>
    %1 = arith.truncf %0 : vector<8x16xf32> to vector<8x16xbf16>
    %c0_1 = arith.constant 0 : index
    %c0_2 = arith.constant 0 : index
    %2 = vector.load %arg2[%c0_1, %c0_2] : memref<16x128xbf16, #tpu.memory_space<vmem>>, vector<16x128xbf16>
    %cst = arith.constant dense<0.000000e+00> : vector<8x128xf32>
    %3 = tpu.matmul %1, %2, %cst {dimension_numbers = #tpu.dot_dimension_numbers<[1], [0], [0], [1], [0, 0, 1, 1], [], []>} : vector<8x16xbf16>, vector<16x128xbf16>, vector<8x128xf32> -> vector<8x128xf32>
    %c0_3 = arith.constant 0 : index
    %c0_4 = arith.constant 0 : index
    %4 = vector.load %arg3[%c0_3, %c0_4] : memref<1x128xf32, #tpu.memory_space<vmem>>, vector<1x128xf32>
    %5 = vector.broadcast %4 : vector<1x128xf32> to vector<8x128xf32>
    %6 = arith.addf %3, %5 : vector<8x128xf32>
    %7 = arith.truncf %6 : vector<8x128xf32> to vector<8x128xbf16>
    %8 = math.tanh %7 : vector<8x128xbf16>
    %c0_5 = arith.constant 0 : index
    %c0_6 = arith.constant 0 : index
    %9 = vector.load %arg4[%c0_5, %c0_6] : memref<128x128xbf16, #tpu.memory_space<vmem>>, vector<128x128xbf16>
    %cst_7 = arith.constant dense<0.000000e+00> : vector<8x128xf32>
    %10 = tpu.matmul %8, %9, %cst_7 {dimension_numbers = #tpu.dot_dimension_numbers<[1], [0], [0], [1], [0, 0, 1, 1], [], []>} : vector<8x128xbf16>, vector<128x128xbf16>, vector<8x128xf32> -> vector<8x128xf32>
    %c0_8 = arith.constant 0 : index
    %c0_9 = arith.constant 0 : index
    %11 = vector.load %arg5[%c0_8, %c0_9] : memref<1x128xf32, #tpu.memory_space<vmem>>, vector<1x128xf32>
    %12 = vector.broadcast %11 : vector<1x128xf32> to vector<8x128xf32>
    %13 = arith.addf %10, %12 : vector<8x128xf32>
    %14 = arith.truncf %13 : vector<8x128xf32> to vector<8x128xbf16>
    %15 = math.tanh %14 : vector<8x128xbf16>
    %c0_10 = arith.constant 0 : index
    %c0_11 = arith.constant 0 : index
    %16 = vector.load %arg6[%c0_10, %c0_11] : memref<128x8xbf16, #tpu.memory_space<vmem>>, vector<128x8xbf16>
    %cst_12 = arith.constant dense<0.000000e+00> : vector<8x8xf32>
    %17 = tpu.matmul %15, %16, %cst_12 {dimension_numbers = #tpu.dot_dimension_numbers<[1], [0], [0], [1], [0, 0, 1, 1], [], []>} : vector<8x128xbf16>, vector<128x8xbf16>, vector<8x8xf32> -> vector<8x8xf32>
    %c0_13 = arith.constant 0 : index
    %c0_14 = arith.constant 0 : index
    %18 = vector.load %arg7[%c0_13, %c0_14] : memref<1x8xf32, #tpu.memory_space<vmem>>, vector<1x8xf32>
    %19 = vector.broadcast %18 : vector<1x8xf32> to vector<8x8xf32>
    %20 = arith.addf %17, %19 : vector<8x8xf32>
    %c0_15 = arith.constant 0 : index
    %c0_16 = arith.constant 0 : index
    %21 = vector.load %arg8[%c0_15, %c0_16] : memref<8x8xf32, #tpu.memory_space<vmem>>, vector<8x8xf32>
    tpu.vector_store %arg8[%c0_15, %c0_16], %20 {strides = array<i32>} : memref<8x8xf32, #tpu.memory_space<vmem>>, vector<8x8xf32>,
    return
  }
  func.func @transform_0(%arg0: i32) -> (i32, i32) {
    %c0_i32 = arith.constant 0 : i32
    %c0_i32_0 = arith.constant 0 : i32
    return %arg0, %c0_i32 : i32, i32
  }
  func.func @transform_1(%arg0: i32) -> (i32, i32) {
    %c0_i32 = arith.constant 0 : i32
    %c0_i32_0 = arith.constant 0 : i32
    %c0_i32_1 = arith.constant 0 : i32
    return %c0_i32, %c0_i32_0 : i32, i32
  }
  func.func @transform_2(%arg0: i32) -> (i32, i32) {
    %c0_i32 = arith.constant 0 : i32
    %c0_i32_0 = arith.constant 0 : i32
    %c0_i32_1 = arith.constant 0 : i32
    return %c0_i32, %c0_i32_0 : i32, i32
  }
  func.func @transform_3(%arg0: i32) -> (i32, i32) {
    %c0_i32 = arith.constant 0 : i32
    %c0_i32_0 = arith.constant 0 : i32
    %c0_i32_1 = arith.constant 0 : i32
    return %c0_i32, %c0_i32_0 : i32, i32
  }
  func.func @transform_4(%arg0: i32) -> (i32, i32) {
    %c0_i32 = arith.constant 0 : i32
    %c0_i32_0 = arith.constant 0 : i32
    %c0_i32_1 = arith.constant 0 : i32
    return %c0_i32, %c0_i32_0 : i32, i32
  }
  func.func @transform_5(%arg0: i32) -> (i32, i32) {
    %c0_i32 = arith.constant 0 : i32
    %c0_i32_0 = arith.constant 0 : i32
    %c0_i32_1 = arith.constant 0 : i32
    return %c0_i32, %c0_i32_0 : i32, i32
  }
  func.func @transform_6(%arg0: i32) -> (i32, i32) {
    %c0_i32 = arith.constant 0 : i32
    %c0_i32_0 = arith.constant 0 : i32
    %c0_i32_1 = arith.constant 0 : i32
    return %c0_i32, %c0_i32_0 : i32, i32
  }
  func.func @transform_7(%arg0: i32) -> (i32, i32) {
    %c0_i32 = arith.constant 0 : i32
    %c0_i32_0 = arith.constant 0 : i32
    return %arg0, %c0_i32 : i32, i32
  }
}

</mosaic_0001>

<bundles_post_ra>
// kernel: ddpg_actor_forward.1
= control target key start
LH: loop header
LB: loop body
LE: loop exit
PB: predicated region body
PF: predicated region fallthrough
CT: control target
= control target key end

     0   :  { %v466_v1 = vmov 0.0   ;;  %vm45_vm0 = vcmask 130048   ;;  %vm467_vm1 = vmmov 0   ;;  %s604_s0 = inlined_call_operand.vmem [shape: f32[8,16], index: 0, kind: input, shape index: {}]   ;;  %s605_s1 = inlined_call_operand.vmem [shape: bf16[16,128], index: 1, kind: input, shape index: {}]   ;;  %s606_s2 = inlined_call_operand.vmem [shape: f32[1,128], index: 2, kind: input, shape index: {}]   ;;  %s607_s3 = inlined_call_operand.vmem [shape: bf16[128,128], index: 3, kind: input, shape index: {}]   ;;  %s608_s4 = inlined_call_operand.vmem [shape: f32[1,128], index: 4, kind: input, shape index: {}]   ;;  %s609_s5 = inlined_call_operand.vmem [shape: bf16[128,8], index: 5, kind: input, shape index: {}]   ;;  %s610_s6 = inlined_call_operand.vmem [shape: f32[1,8], index: 6, kind: input, shape index: {}]   ;;  %s611_s7 = inlined_call_operand.hbm [shape: f32[8,8], index: 7, kind: output, shape index: {}]  }
   0x1   :  { %v421_v0 = vld [vmem:[%s605_s1] sm:$0xff]   ;;  %372 = vmatprep.subr.bf16.mxu0 %v466_v1  ;;  %378 = vmatprep.subr.bf16.mxu1 %v466_v1  ;;  %v423_v5 = vld [vmem:[%s607_s3 + $0x8] sm:$0xff]   ;;  %v424_v6 = vld [vmem:[%s607_s3 + $0x10] sm:$0xff]  }
   0x2   :  { %v28_v2 = vld [vmem:[%s604_s0] sm:$0xff]  ;;  %373 = vmatpush3.bf16.msra.mxu0 %v421_v0  ;;  %374 = vmatprep.mubr.msk.bf16.mxu0 %vm467_vm1, %v466_v1  ;;  %v425_v7 = vld [vmem:[%s607_s3 + $0x18] sm:$0xff]  }
   0x3   :  { %v422_v3 = vld [vmem:[%s607_s3] sm:$0xff]   ;;  %v29_v4 = vpack.c.bf16 %v28_v2, %v28_v2  ;;  %394 = vmatprep.mubr.msk.bf16.mxu1 %vm467_vm1, %v466_v1  ;;  %398 = vmatprep.subr.bf16.mxu0 %v466_v1 }
   0x4   :  { %379 = vmatpush3.bf16.msra.mxu1 %v422_v3 }
   0x5   :  { %380 = vmatprep.subr.bf16.mxu1 %v466_v1  ;;  %375 = vmatmul.mubr.msk.bf16.vlgmr.msra.gmra.mrb[0].mxu0 %vm45_vm0, %v29_v4 }
   0x6   :  { %414 = vmatprep.mubr.msk.bf16.mxu0 %vm467_vm1, %v466_v1 }
   0x8   :  { %381 = vmatpush3.bf16.msra.mxu1 %v423_v5 }
   0x9   :  { %382 = vmatprep.subr.bf16.mxu1 %v466_v1 }
   0xc   :  { %383 = vmatpush3.bf16.msra.mxu1 %v424_v6 }
   0xd   :  { %384 = vmatprep.subr.bf16.mxu1 %v466_v1 }
   0xe   :  { %12 = vsyncpa [#allocation3], 0  ;;  %v426_v8 = vld [vmem:[%s607_s3 + $0x20] sm:$0xff]   ;;  %v427_v9 = vld [vmem:[%s607_s3 + $0x28] sm:$0xff]   ;;  %vm315_vm2 = vcmask 64512  }
   0xf   :  { %v428_v10 = vld [vmem:[%s607_s3 + $0x30] sm:$0xff]   ;;  %v429_v11 = vld [vmem:[%s607_s3 + $0x38] sm:$0xff]   ;;  %v430_v12 = vld [vmem:[%s609_s5] sm:$0xff]  }
  0x10   :  { %385 = vmatpush3.bf16.msra.mxu1 %v425_v7  ;;  %399 = vmatpush3.bf16.msra.mxu0 %v430_v12  ;;  %v431_v13 = vld [vmem:[%s609_s5 + $0x8] sm:$0xff]   ;;  %v432_v14 = vld [vmem:[%s609_s5 + $0x10] sm:$0xff]   ;;  %v433_v15 = vld [vmem:[%s609_s5 + $0x18] sm:$0xff]  }
  0x11   :  { %386 = vmatprep.subr.bf16.mxu1 %v466_v1  ;;  %400 = vmatprep.subr.bf16.mxu0 %v466_v1  ;;  %v331_v16 = vld [vmem:[%s606_s2] ss:$0 sm:$0xff]  ;;  %v435_v25 = vld [vmem:[%s609_s5 + $0x28] sm:$0xff]   ;;  %v436_v26 = vld [vmem:[%s609_s5 + $0x30] sm:$0xff]  }
  0x12   :  { %v434_v24 = vld [vmem:[%s609_s5 + $0x20] sm:$0xff]   ;;  %v437_v27 = vld [vmem:[%s609_s5 + $0x38] sm:$0xff]   ;;  %s468_s5 = smov [#allocation2]  }
  0x13   :  { %v334_v28 = vld [vmem:[%s608_s4] ss:$0 sm:$0xff]  ;;  %s323_s14 = sshll.u32 %s468_s5, 4  ;;  %s324_s14 = int_to_ptr.vmem [resolvable:$true] %s323_s14 }
  0x14   :  { %387 = vmatpush3.bf16.msra.mxu1 %v426_v8  ;;  %401 = vmatpush3.bf16.msra.mxu0 %v431_v13  ;;  %v343_v36 = vld [vmem:[%s610_s6] ss:$0 sm:$0xff]  ;;  %s442_s4 = scalar_lea.vmem %s324_s14, 128  ;;  %p447_p1 = scmp.lt.s32.totalorder %s324_s14, %s324_s14 }
  0x15   :  { %388 = vmatprep.subr.bf16.mxu1 %v466_v1  ;;  %402 = vmatprep.subr.bf16.mxu0 %v466_v1  ;;  %p443_p0 = scmp.ne.s32.totalorder %s324_s14, %s442_s4  ;;  %p448_p2 = scmp.lt.s32.totalorder %s442_s4, %s442_s4 }
  0x17   :  { %p449_p3 = por %p448_p2, %p447_p1 }
  0x18   :  { %389 = vmatpush3.bf16.msra.mxu1 %v427_v9  ;;  %403 = vmatpush3.bf16.msra.mxu0 %v432_v14 }
  0x19   :  { %390 = vmatprep.subr.bf16.mxu1 %v466_v1  ;;  %404 = vmatprep.subr.bf16.mxu0 %v466_v1  ;;  %p450_p4 = pnand %p449_p3, %p443_p0 }
  0x1c   :  { %391 = vmatpush3.bf16.msra.mxu1 %v428_v10  ;;  %405 = vmatpush3.bf16.msra.mxu0 %v433_v15 }
  0x1d   :  { %392 = vmatprep.subr.bf16.mxu1 %v466_v1  ;;  %406 = vmatprep.subr.bf16.mxu0 %v466_v1 }
  0x20   :  { %393 = vmatpush3.bf16.msra.mxu1 %v429_v11  ;;  %407 = vmatpush3.bf16.msra.mxu0 %v434_v24 }
  0x21   :  { %408 = vmatprep.subr.bf16.mxu0 %v466_v1 }
  0x24   :  { %409 = vmatpush3.bf16.msra.mxu0 %v435_v25 }
  0x25   :  { %410 = vmatprep.subr.bf16.mxu0 %v466_v1 }
  0x28   :  { %411 = vmatpush3.bf16.msra.mxu0 %v436_v26 }
  0x29   :  { %412 = vmatprep.subr.bf16.mxu0 %v466_v1 }
  0x2c   :  { %413 = vmatpush3.bf16.msra.mxu0 %v437_v27 }
  0xd8   :  { %v83_v17 = vpop.f32.mrb[0].mxu0 }
  0xd9   :  { %v84_v18 = vadd.f32 %v331_v16, %v83_v17  ;;  %v376_v19 = vpop.f32.mrb[1].mxu0 }
  0xda   :  { %v86_v20 = vpop.f32.mrb[2].mxu0 }
  0xdb   :  { %v89_v21 = vpack.c.bf16 %v84_v18, %v84_v18  ;;  %v377_v22 = vpop.f32.mrb[3].mxu0 }
  0xdd   :  { %438 = vtanh.bf16 %v89_v21 }
  0xe8   :  { %v439_v23 = vpop.eup %438 }
  0xe9   :  { %395 = vmatmul.mubr.bf16.vlgmr.msra.gmra.mrb[0].mxu1 %v439_v23 }
 0x1bc   :  { %v196_v29 = vpop.f32.mrb[0].mxu1 }
 0x1bd   :  { %v197_v30 = vadd.f32 %v334_v28, %v196_v29  ;;  %v396_v31 = vpop.f32.mrb[1].mxu1 }
 0x1be   :  { %v199_v32 = vpop.f32.mrb[2].mxu1 }
 0x1bf   :  { %v202_v33 = vpack.c.bf16 %v197_v30, %v197_v30  ;;  %v397_v34 = vpop.f32.mrb[3].mxu1 }
 0x1c1   :  { %440 = vtanh.bf16 %v202_v33 }
 0x1cc   :  { %v441_v35 = vpop.eup %440 }
 0x1cd   :  { %415 = vmatmul.mubr.bf16.vlgmr.msra.gmra.mrb[4].mxu0 %v441_v35 }
 0x2a0   :  { %v309_v37 = vpop.f32.mrb[4].mxu0 }
 0x2a1   :  { %v310_v38 = vadd.f32 %v343_v36, %v309_v37  ;;  %v416_v39 = vpop.f32.mrb[5].mxu0 }
 0x2a2   :  { %v312_v40 = vpop.f32.mrb[6].mxu0 }
 0x2a3   :  { %v417_v41 = vpop.f32.mrb[7].mxu0  ;;  %316 = vst.msk [vmem:[#allocation2] sm:$0xff] %vm315_vm2, %v310_v38 }
 0x2a4   :  { %453 = shalt.err (!%p450_p4)
}
 0x2a5   :  { %s454_s6 = scalar_lea.hbm %s611_s7, 128 }
 0x2a6   :  { %p455_p5 = scmp.ne.s32.totalorder %s611_s7, %s454_s6  ;;  %p458_p6 = scmp.lt.u32.totalorder %s454_s6, %s611_s7 }
 0x2a8   :  { %p460_p7 = pnand %p458_p6, %p455_p5 }
 0x2aa   :  { %463 = shalt.err (!%p460_p7)
}
 0x2ab   :  { %326 = dma.vmem_to_hbm [thread:$0]  %s324_s14, 128, %s611_s7, [#allocation3]  }
 0x2ac   :  { %464 = dma.done.wait [#allocation3], 128  }
 0x2ad   :  { %465 = vsyncadd [#allocation3], 4294967168 }
 0x2ae   :  { %330 = vsyncpa [#allocation3], 1 }

</bundles_post_ra>
